<compile_context>
chip_gen: v5e
topology: v5e:2x2
jax: 0.10.0
libtpu: 0.0.40
codegen_flags: <defaults>
</compile_context>

<pallas_src>
import jax
import jax.numpy as jnp
from jax.experimental import pallas as pl
from jax.experimental.pallas import tpu as pltpu


def _round_up(x, m):
    return (x + m - 1) // m * m


def _csmddi_kernel(e1_ref, e2_ref, w_ref, s_ref, o_ref):
    # e1_ref/e2_ref: (tb, d)           gathered head/tail embeddings (compute dtype)
    # w_ref:         (d, tk*d)         relation-chunk operator  W[i, t*d + j] = M[k0+t, i, j]
    # s_ref:         (tk*d, Kp)        0/1 chunk summer into lane-padded output columns
    # o_ref:         (tb, Kp) float32  resident accumulator across the K-chunk grid axis
    j = pl.program_id(1)

    @pl.when(j == 0)
    def _init():
        o_ref[...] = jnp.zeros_like(o_ref)

    d = e2_ref.shape[1]
    tk = w_ref.shape[1] // d

    # H[b, t*d + jj] = sum_i e1[b, i] * M[k0+t, i, jj]   -- one wide MXU matmul per chunk
    h = jnp.dot(e1_ref[...], w_ref[...], preferred_element_type=jnp.float32)  # (tb, tk*d) f32

    # Tile e2 across the tk relations of this chunk (elementwise math kept in f32).
    # Bounded to tk copies so H / e2_tile / product stay register-resident.
    e2f = e2_ref[...].astype(jnp.float32)
    e2_tile = jnp.concatenate([e2f] * tk, axis=-1) if tk > 1 else e2f          # (tb, tk*d)

    z = (h * e2_tile).astype(s_ref.dtype)
    # pred[b, k0+t] += sum_jj H[b, t*d + jj] * e2[b, jj]
    # (chunk-sum via 0/1 matmul into a lane-dense, padded output block)
    o_ref[...] += jnp.dot(z, s_ref[...], preferred_element_type=jnp.float32)


def csmddi_forward(E_record, M, idx_head, idx_tail, *, block_b=512,
                   compute_dtype=jnp.bfloat16):
    """pred[b, k] = E_record[idx_head[b]] @ M[k] @ E_record[idx_tail[b]]  ->  (B, K) f32."""
    n, d = E_record.shape
    K = M.shape[0]
    B = idx_head.shape[0]

    # ---- gather outside the kernel (no in-kernel one-hot gather; E stays in HBM) ----
    e1 = jnp.take(E_record, idx_head.astype(jnp.int32), axis=0)   # (B, d)
    e2 = jnp.take(E_record, idx_tail.astype(jnp.int32), axis=0)   # (B, d)

    # ---- batch tiling: multiple of 8 sublanes; >=2 grid steps when B allows so the
    #      "parallel" axis can shard across both TensorCores on megacore parts ----
    tb = min(block_b, _round_up(B, 8))
    if B > 8:
        tb = min(tb, _round_up(-(-B // 2), 8))
    Bp = _round_up(B, tb)
    pad_b = Bp - B
    e1 = jnp.pad(e1, ((0, pad_b), (0, 0))).astype(compute_dtype)
    e2 = jnp.pad(e2, ((0, pad_b), (0, 0))).astype(compute_dtype)

    # ---- relation-axis chunking (bounds the (tb, tk*d) live intermediates) ----------
    tk = max(1, min(K, 512 // max(d, 1)))
    if (tk * d) % 128 != 0:
        tk = K                        # single chunk: block == full array (always legal)
    Kc = _round_up(K, tk)             # relation count padded with zero relations
    Kp = _round_up(max(K, Kc), 128)   # lane-dense padded output width

    # W[i, k*d + j] = M[k, i, j]  (relations zero-padded to Kc), lane-dense layout.
    M_pad = jnp.pad(M, ((0, Kc - K), (0, 0), (0, 0)))
    W = jnp.transpose(M_pad, (1, 0, 2)).reshape(d, Kc * d).astype(compute_dtype)
    # Block-diagonal chunk summer into the lane-padded output: S[k*d + j, k] = 1.
    S = (jnp.arange(Kc * d)[:, None] // d
         == jnp.arange(Kp)[None, :]).astype(compute_dtype)

    nb, nk = Bp // tb, Kc // tk
    esz = jnp.dtype(compute_dtype).itemsize
    flops = 2 * Bp * (d * Kc * d + Kc * d * Kp) + Bp * Kc * d
    bytes_accessed = esz * (2 * Bp * d + d * Kc * d + Kc * d * Kp) + 4 * Bp * Kp

    # TODO(synk): if d were large/aligned (>=128) a 3-D (tb, tk, d) lane-reduce would
    # drop the S matmul entirely; for small d the flat lane-dense layout is better.
    out = pl.pallas_call(
        _csmddi_kernel,
        out_shape=jax.ShapeDtypeStruct((Bp, Kp), jnp.float32),
        grid=(nb, nk),
        in_specs=[
            pl.BlockSpec((tb, d), lambda i, j: (i, 0)),        # e_head tile
            pl.BlockSpec((tb, d), lambda i, j: (i, 0)),        # e_tail tile
            pl.BlockSpec((d, tk * d), lambda i, j: (0, j)),    # W relation chunk
            pl.BlockSpec((tk * d, Kp), lambda i, j: (j, 0)),   # S chunk summer
        ],
        out_specs=pl.BlockSpec((tb, Kp), lambda i, j: (i, 0)),  # lane-dense accumulator
        compiler_params=pltpu.CompilerParams(
            dimension_semantics=("parallel", "arbitrary"),
            vmem_limit_bytes=64 * 1024 * 1024,
        ),
        cost_estimate=pl.CostEstimate(flops=flops, transcendentals=0,
                                      bytes_accessed=bytes_accessed),
    )(e1, e2, W, S)
    return out[:B, :K]


def _xavier_uniform(key, shape, fan_in, fan_out, dtype=jnp.float32):
    limit = (6.0 / (fan_in + fan_out)) ** 0.5
    return jax.random.uniform(key, shape, dtype=dtype, minval=-limit, maxval=limit)


if __name__ == "__main__":
    # Small synthetic sizes consistent with the module:
    #   entity_num n = 16, dim d = 32, relation_num K = 8, batch of pairs B = 8
    n, d, K, B = 16, 32, 8, 8

    key = jax.random.PRNGKey(0)
    k_e, k_m, k_h, k_t = jax.random.split(key, 4)

    # TODO(synk): pre_process (sklearn PLSRegression fit/predict filling E_record)
    # has no Pallas equivalent; E_record is xavier-initialized for this synthetic run.
    E_record = _xavier_uniform(k_e, (n, d), fan_in=n, fan_out=d)          # (n, d)
    M = _xavier_uniform(k_m, (K, d, d), fan_in=d, fan_out=d)              # (K, d, d)

    # data = (head indices, tail indices)
    idx_head = jax.random.randint(k_h, (B,), 0, n, dtype=jnp.int32)
    idx_tail = jax.random.randint(k_t, (B,), 0, n, dtype=jnp.int32)

    # Pure-JAX reference of the torch forward semantics ((K, B).transpose(0, 1)).
    e1 = E_record[idx_head]
    e2 = E_record[idx_tail]
    pred_ref = jnp.einsum("bd,kde,be->bk", e1, M, e2)

    # Exact path (f32 MXU operands): tight tolerance.
    pred_f32 = jax.block_until_ready(
        csmddi_forward(E_record, M, idx_head, idx_tail, compute_dtype=jnp.float32))
    assert pred_f32.shape == (B, K)
    assert jnp.allclose(pred_f32, pred_ref, atol=1e-4, rtol=1e-4), (
        f"f32 max abs err {jnp.max(jnp.abs(pred_f32 - pred_ref))}"
    )

    # Default fast path (bf16 MXU operands, f32 accumulation): loose tolerance.
    pred_bf16 = jax.block_until_ready(
        csmddi_forward(E_record, M, idx_head, idx_tail))
    assert pred_bf16.shape == (B, K)
    assert jnp.allclose(pred_bf16, pred_ref, atol=5e-2, rtol=5e-2), (
        f"bf16 max abs err {jnp.max(jnp.abs(pred_bf16 - pred_ref))}"
    )

    print("KERNEL_OK")
</pallas_src>

<mosaic_0001>
module attributes {stable_mosaic.version = 11 : i64} {
  func.func @_csmddi_kernel(%arg0: i32, %arg1: i32, %arg2: memref<8x32xf32, #tpu.memory_space<vmem>>, %arg3: memref<8x32xf32, #tpu.memory_space<vmem>>, %arg4: memref<32x256xf32, #tpu.memory_space<vmem>>, %arg5: memref<256x128xf32, #tpu.memory_space<vmem>>, %arg6: memref<8x128xf32, #tpu.memory_space<vmem>>) attributes {dimension_semantics = [#tpu.dimension_semantics<parallel>, #tpu.dimension_semantics<arbitrary>], iteration_bounds = array<i64: 1, 1>, scalar_prefetch = 0 : i64, scratch_operands = 0 : i64, tpu.core_type = #tpu.core_type<tc>, window_params = [{transform_indices = @transform_0, window_bounds = array<i64: 8, 32>}, {transform_indices = @transform_1, window_bounds = array<i64: 8, 32>}, {transform_indices = @transform_2, window_bounds = array<i64: 32, 256>}, {transform_indices = @transform_3, window_bounds = array<i64: 256, 128>}, {transform_indices = @transform_4, window_bounds = array<i64: 8, 128>}]} {
    %c0_i32 = arith.constant 0 : i32
    %0 = arith.cmpi eq, %arg1, %c0_i32 : i32
    %1 = arith.extui %0 : i1 to i32
    %c0_i32_0 = arith.constant 0 : i32
    %2 = arith.cmpi ne, %1, %c0_i32_0 : i32
    scf.if %2 {
      %cst_13 = arith.constant 0.000000e+00 : f32
      %14 = vector.broadcast %cst_13 : f32 to vector<8x128xf32>
      %c0_14 = arith.constant 0 : index
      %c0_15 = arith.constant 0 : index
      %15 = vector.load %arg6[%c0_14, %c0_15] : memref<8x128xf32, #tpu.memory_space<vmem>>, vector<8x128xf32>
      tpu.vector_store %arg6[%c0_14, %c0_15], %14 {strides = array<i32>} : memref<8x128xf32, #tpu.memory_space<vmem>>, vector<8x128xf32>,
    } else {
    }
    %c0 = arith.constant 0 : index
    %c0_1 = arith.constant 0 : index
    %3 = vector.load %arg2[%c0, %c0_1] : memref<8x32xf32, #tpu.memory_space<vmem>>, vector<8x32xf32>
    %c0_2 = arith.constant 0 : index
    %c0_3 = arith.constant 0 : index
    %4 = vector.load %arg4[%c0_2, %c0_3] : memref<32x256xf32, #tpu.memory_space<vmem>>, vector<32x256xf32>
    %cst = arith.constant dense<0.000000e+00> : vector<8x256xf32>
    %5 = tpu.matmul %3, %4, %cst {dimension_numbers = #tpu.dot_dimension_numbers<[1], [0], [0], [1], [0, 0, 1, 1], [], []>} : vector<8x32xf32>, vector<32x256xf32>, vector<8x256xf32> -> vector<8x256xf32>
    %c0_4 = arith.constant 0 : index
    %c0_5 = arith.constant 0 : index
    %6 = vector.load %arg3[%c0_4, %c0_5] : memref<8x32xf32, #tpu.memory_space<vmem>>, vector<8x32xf32>
    %7 = tpu.concatenate %6, %6, %6, %6, %6, %6, %6, %6 in 1 : vector<8x32xf32>, vector<8x32xf32>, vector<8x32xf32>, vector<8x32xf32>, vector<8x32xf32>, vector<8x32xf32>, vector<8x32xf32>, vector<8x32xf32> -> vector<8x256xf32>
    %8 = arith.mulf %5, %7 : vector<8x256xf32>
    %c0_6 = arith.constant 0 : index
    %c0_7 = arith.constant 0 : index
    %9 = vector.load %arg6[%c0_6, %c0_7] : memref<8x128xf32, #tpu.memory_space<vmem>>, vector<8x128xf32>
    %c0_8 = arith.constant 0 : index
    %c0_9 = arith.constant 0 : index
    %10 = vector.load %arg5[%c0_8, %c0_9] : memref<256x128xf32, #tpu.memory_space<vmem>>, vector<256x128xf32>
    %cst_10 = arith.constant dense<0.000000e+00> : vector<8x128xf32>
    %11 = tpu.matmul %8, %10, %cst_10 {dimension_numbers = #tpu.dot_dimension_numbers<[1], [0], [0], [1], [0, 0, 1, 1], [], []>} : vector<8x256xf32>, vector<256x128xf32>, vector<8x128xf32> -> vector<8x128xf32>
    %12 = arith.addf %9, %11 : vector<8x128xf32>
    %c0_11 = arith.constant 0 : index
    %c0_12 = arith.constant 0 : index
    %13 = vector.load %arg6[%c0_11, %c0_12] : memref<8x128xf32, #tpu.memory_space<vmem>>, vector<8x128xf32>
    tpu.vector_store %arg6[%c0_11, %c0_12], %12 {strides = array<i32>} : memref<8x128xf32, #tpu.memory_space<vmem>>, vector<8x128xf32>,
    return
  }
  func.func @transform_0(%arg0: i32, %arg1: i32) -> (i32, i32) {
    %c0_i32 = arith.constant 0 : i32
    %c0_i32_0 = arith.constant 0 : i32
    return %arg0, %c0_i32 : i32, i32
  }
  func.func @transform_1(%arg0: i32, %arg1: i32) -> (i32, i32) {
    %c0_i32 = arith.constant 0 : i32
    %c0_i32_0 = arith.constant 0 : i32
    return %arg0, %c0_i32 : i32, i32
  }
  func.func @transform_2(%arg0: i32, %arg1: i32) -> (i32, i32) {
    %c0_i32 = arith.constant 0 : i32
    %c0_i32_0 = arith.constant 0 : i32
    return %c0_i32, %arg1 : i32, i32
  }
  func.func @transform_3(%arg0: i32, %arg1: i32) -> (i32, i32) {
    %c0_i32 = arith.constant 0 : i32
    %c0_i32_0 = arith.constant 0 : i32
    return %arg1, %c0_i32 : i32, i32
  }
  func.func @transform_4(%arg0: i32, %arg1: i32) -> (i32, i32) {
    %c0_i32 = arith.constant 0 : i32
    %c0_i32_0 = arith.constant 0 : i32
    return %arg0, %c0_i32 : i32, i32
  }
}

</mosaic_0001>

<bundles_post_ra>
// kernel: tpu_custom_call.1
= control target key start
LH: loop header
LB: loop body
LE: loop exit
PB: predicated region body
PF: predicated region fallthrough
CT: control target
= control target key end

     0   :  { %9 = vsyncpa [#allocation3], 0  ;;  %s451_s0 = inlined_call_operand.hbm [shape: f32[8,32], index: 0, kind: input, shape index: {}]   ;;  %s452_s1 = inlined_call_operand.hbm [shape: f32[8,32], index: 1, kind: input, shape index: {}]   ;;  %s453_s2 = inlined_call_operand.hbm [shape: f32[32,256], index: 2, kind: input, shape index: {}]   ;;  %s454_s3 = inlined_call_operand.hbm [shape: f32[256,128], index: 3, kind: input, shape index: {}]   ;;  %s455_s4 = inlined_call_operand.hbm [shape: f32[8,128], index: 4, kind: output, shape index: {}]  }
   0x1   :  { %10 = vsyncpa [#allocation6], 0 }
   0x2   :  { %11 = vsyncpa [#allocation9], 0  ;;  %s29_s17 = sshll.u32 %s452_s1, 4  ;;  %s30_s17 = int_to_ptr.hbm [resolvable:$true] %s29_s17 }
   0x3   :  { %12 = vsyncpa [#allocation4], 0  ;;  %s390_s18 = smov [#allocation5]   ;;  %s18_s22 = sshll.u32 %s451_s0, 4  ;;  %s19_s22 = int_to_ptr.hbm [resolvable:$true] %s18_s22 }
   0x4   :  { %s31_s19 = sshll.u32 %s390_s18, 4  ;;  %s391_s23 = smov [#allocation2]   ;;  %s32_s19 = int_to_ptr.vmem [resolvable:$true] %s31_s19 }
   0x5   :  { %34 = dma.hbm_to_vmem [thread:$0]  %s30_s17, 128, %s32_s19, [#allocation6]  }
   0x6   :  { %s20_s24 = sshll.u32 %s391_s23, 4  ;;  %s39_s27 = sshll.u32 %s453_s2, 4  ;;  %s21_s24 = int_to_ptr.vmem [resolvable:$true] %s20_s24  ;;  %s40_s27 = int_to_ptr.hbm [resolvable:$true] %s39_s27 }
   0x7   :  { %23 = dma.hbm_to_vmem [thread:$0]  %s19_s22, 128, %s21_s24, [#allocation3]  }
   0x8   :  { %s392_s1 = smov [#allocation7]   ;;  %s52_s5 = sshll.u32 %s454_s3, 4  ;;  %s53_s5 = int_to_ptr.hbm [resolvable:$true] %s52_s5 }
   0x9   :  { %s41_s28 = sshll.u32 %s392_s1, 4  ;;  %s393_s6 = smov 256   ;;  %s42_s28 = int_to_ptr.vmem [resolvable:$true] %s41_s28 }
   0xa   :  { %s394_s0 = smov 16   ;;  %s395_s7 = smov [#allocation8]  }
   0xb   :  { %47 = dma.hbm_to_vmem [thread:$0]  %s40_s27, 1024, %s42_s28, [#allocation6], %s393_s6, %s393_s6, %s394_s0  }
   0xc   :  { %s54_s8 = sshll.u32 %s395_s7, 4  ;;  %s396_s9 = smov 128   ;;  %s55_s8 = int_to_ptr.vmem [resolvable:$true] %s54_s8 }
   0xd   :  { %s397_s10 = smov 8  }
   0xe   :  { %60 = dma.hbm_to_vmem [thread:$0]  %s53_s5, 4096, %s55_s8, [#allocation9], %s396_s9, %s396_s9, %s397_s10  }
   0xf   :  { %382 = dma.done.wait [#allocation3], 128  }
  0x10   :  { %383 = vsyncadd [#allocation3], 4294967168 }
  0x11   :  { %384 = dma.done.wait [#allocation6], 1152  }
  0x12   :  { %385 = vsyncadd [#allocation6], 4294966144 }
  0x13   :  { %386 = dma.done.wait [#allocation9], 4096  }
  0x14   :  { %387 = vsyncadd [#allocation9], 4294963200  ;;  %v89_v0 = vld [vmem:[#allocation7 + $0x30] sm:$0xff]  ;;  %v90_v1 = vld [vmem:[#allocation7 + $0x38] sm:$0xff]  ;;  %s398_s2 = smov 32   ;;  %s399_s3 = smov 96  }
  0x15   :  { %v439_v2 = vld [vmem:[#allocation5] sm:$0xff]  ;;  %107 = vmatpush.msra.mxu0 %v89_v0  ;;  %127 = vmatpush.msra.mxu1 %v90_v1  ;;  %v87_v3 = vld [vmem:[#allocation7 + $0x20] sm:$0xff]  ;;  %v88_v4 = vld [vmem:[#allocation7 + $0x28] sm:$0xff]  ;;  %vm91_vm0 = vcmask 261120   ;;  %s400_s11 = smov 64   ;;  %vm147_vm1 = vcmask 523264  }
  0x16   :  { %137 = vrot.lane.b32.xlu0 %v439_v2, %s398_s2  ;;  %v85_v5 = vld [vmem:[#allocation7 + $0x10] sm:$0xff]  ;;  %v86_v6 = vld [vmem:[#allocation7 + $0x18] sm:$0xff]  ;;  %143 = vrot.lane.b32.xlu1 %v439_v2, %s399_s3  ;;  %v83_v7 = vld [vmem:[#allocation7] sm:$0xff]  ;;  %vm149_vm2 = vcmask 785408   ;;  %s401_s12 = smov [#allocation10]   ;;  %s235_s16 = sshll.u32 %s455_s4, 4  ;;  %s236_s16 = int_to_ptr.hbm [resolvable:$true] %s235_s16 }
  0x17   :  { %108 = vmatpush.msra.mxu0 %v87_v3  ;;  %128 = vmatpush.msra.mxu1 %v88_v4  ;;  %v169_v8 = vld [vmem:[#allocation8 + $0x78] sm:$0xff]  ;;  %v84_v10 = vld [vmem:[#allocation7 + $0x8] sm:$0xff]  ;;  %v168_v11 = vld [vmem:[#allocation8 + $0x70] sm:$0xff]  ;;  %s233_s13 = sshll.u32 %s401_s12, 4  ;;  %s234_s13 = int_to_ptr.vmem [resolvable:$true] %s233_s13 }
  0x18   :  { %v185_v9 = vld [vmem:[#allocation8 + $0xf8] sm:$0xff]  ;;  %186 = vmatpush.msra.mxu2 %v169_v8  ;;  %v184_v12 = vld [vmem:[#allocation8 + $0xf0] sm:$0xff]  ;;  %v167_v14 = vld [vmem:[#allocation8 + $0x68] sm:$0xff] }
  0x19   :  { %206 = vmatpush.msra.mxu3 %v185_v9  ;;  %109 = vmatpush.msra.mxu0 %v85_v5  ;;  %v82_v13 = vld [vmem:[#allocation2] sm:$0xff]  ;;  %v183_v15 = vld [vmem:[#allocation8 + $0xe8] sm:$0xff]  ;;  %v166_v16 = vld [vmem:[#allocation8 + $0x60] sm:$0xff] }
  0x1a   :  { %129 = vmatpush.msra.mxu1 %v86_v6  ;;  %187 = vmatpush.msra.mxu2 %v168_v11  ;;  %v182_v17 = vld [vmem:[#allocation8 + $0xe0] sm:$0xff]  ;;  %v165_v18 = vld [vmem:[#allocation8 + $0x58] sm:$0xff]  ;;  %v164_v20 = vld [vmem:[#allocation8 + $0x50] sm:$0xff] }
  0x1b   :  { %207 = vmatpush.msra.mxu3 %v184_v12  ;;  %110 = vmatpush.msra.mxu0 %v83_v7  ;;  %v181_v19 = vld [vmem:[#allocation8 + $0xd8] sm:$0xff]  ;;  %v180_v21 = vld [vmem:[#allocation8 + $0xd0] sm:$0xff]  ;;  %v163_v22 = vld [vmem:[#allocation8 + $0x48] sm:$0xff] }
  0x1c   :  { %130 = vmatpush.msra.mxu1 %v84_v10  ;;  %247 = vmatmul.msk.f32.vlgmr.msra.gmra.mxu0 %vm91_vm0, %v82_v13  ;;  %v179_v23 = vld [vmem:[#allocation8 + $0xc8] sm:$0xff]  ;;  %v162_v24 = vld [vmem:[#allocation8 + $0x40] sm:$0xff]  ;;  %v161_v26 = vld [vmem:[#allocation8 + $0x38] sm:$0xff] }
  0x1d   :  { %248 = vmatmul.msk.f32.vlgmr.msra.gmra.mxu1 %vm91_vm0, %v82_v13  ;;  %188 = vmatpush.msra.mxu2 %v167_v14  ;;  %v178_v25 = vld [vmem:[#allocation8 + $0xc0] sm:$0xff]  ;;  %v177_v27 = vld [vmem:[#allocation8 + $0xb8] sm:$0xff]  ;;  %v160_v28 = vld [vmem:[#allocation8 + $0x30] sm:$0xff] }
  0x1e   :  { %208 = vmatpush.msra.mxu3 %v183_v15  ;;  %140 = vrot.lane.b32.xlu0 %v439_v2, %s400_s11  ;;  %v176_v29 = vld [vmem:[#allocation8 + $0xb0] sm:$0xff]  ;;  %v159_v30 = vld [vmem:[#allocation8 + $0x28] sm:$0xff]  ;;  %v158_v32 = vld [vmem:[#allocation8 + $0x20] sm:$0xff] }
  0x1f   :  { %189 = vmatpush.msra.mxu2 %v166_v16  ;;  %v175_v31 = vld [vmem:[#allocation8 + $0xa8] sm:$0xff]  ;;  %v174_v33 = vld [vmem:[#allocation8 + $0xa0] sm:$0xff]  ;;  %v157_v34 = vld [vmem:[#allocation8 + $0x18] sm:$0xff] }
  0x20   :  { %209 = vmatpush.msra.mxu3 %v182_v17  ;;  %v173_v35 = vld [vmem:[#allocation8 + $0x98] sm:$0xff]  ;;  %v156_v36 = vld [vmem:[#allocation8 + $0x10] sm:$0xff]  ;;  %v155_v38 = vld [vmem:[#allocation8 + $0x8] sm:$0xff] }
  0x21   :  { %190 = vmatpush.msra.mxu2 %v165_v18  ;;  %v172_v37 = vld [vmem:[#allocation8 + $0x90] sm:$0xff]  ;;  %v171_v39 = vld [vmem:[#allocation8 + $0x88] sm:$0xff]  ;;  %v154_v40 = vld [vmem:[#allocation8] sm:$0xff] }
  0x22   :  { %210 = vmatpush.msra.mxu3 %v181_v19  ;;  %v170_v41 = vld [vmem:[#allocation8 + $0x80] sm:$0xff] }
  0x23   :  { %191 = vmatpush.msra.mxu2 %v164_v20 }
  0x24   :  { %211 = vmatpush.msra.mxu3 %v180_v21 }
  0x25   :  { %192 = vmatpush.msra.mxu2 %v163_v22 }
  0x26   :  { %212 = vmatpush.msra.mxu3 %v179_v23 }
  0x27   :  { %193 = vmatpush.msra.mxu2 %v162_v24 }
  0x28   :  { %213 = vmatpush.msra.mxu3 %v178_v25 }
  0x29   :  { %194 = vmatpush.msra.mxu2 %v161_v26 }
  0x2a   :  { %214 = vmatpush.msra.mxu3 %v177_v27 }
  0x2b   :  { %195 = vmatpush.msra.mxu2 %v160_v28 }
  0x2c   :  { %215 = vmatpush.msra.mxu3 %v176_v29 }
  0x2d   :  { %196 = vmatpush.msra.mxu2 %v159_v30 }
  0x2e   :  { %216 = vmatpush.msra.mxu3 %v175_v31 }
  0x2f   :  { %197 = vmatpush.msra.mxu2 %v158_v32 }
  0x30   :  { %217 = vmatpush.msra.mxu3 %v174_v33 }
  0x31   :  { %198 = vmatpush.msra.mxu2 %v157_v34 }
  0x32   :  { %218 = vmatpush.msra.mxu3 %v173_v35 }
  0x33   :  { %199 = vmatpush.msra.mxu2 %v156_v36 }
  0x34   :  { %219 = vmatpush.msra.mxu3 %v172_v37 }
  0x35   :  { %200 = vmatpush.msra.mxu2 %v155_v38 }
  0x36   :  { %220 = vmatpush.msra.mxu3 %v171_v39 }
  0x37   :  { %201 = vmatpush.msra.mxu2 %v154_v40 }
  0x38   :  { %221 = vmatpush.msra.mxu3 %v170_v41 }
  0x88   :  { %v138_v42 = vpop.permute.xlu0 %137  ;;  %v144_v46 = vpop.permute.xlu1 %143 }
  0x89   :  { %v146_v43 = vsel %vm91_vm0, %v439_v2, %v138_v42 }
  0x90   :  { %v141_v44 = vpop.permute.xlu0 %140 }
  0x91   :  { %v148_v45 = vsel %vm147_vm1, %v146_v43, %v141_v44 }
  0x92   :  { %v150_v48 = vsel %vm149_vm2, %v148_v45, %v144_v46 }
  0x99   :  { %v112_v47 = vpop.f32.mrf.mxu0 }
  0x9a   :  { %v132_v49 = vpop.f32.mrf.mxu1  ;;  %v151_v50 = vmul.f32 %v150_v48, %v112_v47 }
  0x9b   :  { %v152_v51 = vmul.f32 %v150_v48, %v132_v49 }
  0x9c   :  { %202 = vmatmul.f32.vlgmr.msra.gmra.mxu2 %v151_v50 }
  0x9d   :  { %222 = vmatmul.f32.vlgmr.msra.gmra.mxu3 %v152_v51 }
 0x11f   :  { %v203_v52 = vpop.f32.mrf.mxu2 }
 0x120   :  { %v223_v53 = vpop.f32.mrf.mxu3 }
 0x121   :  { %v224_v54 = vadd.f32 %v223_v53, %v203_v52 }
 0x123   :  { %227 = vst [vmem:[#allocation10] sm:$0xff] %v224_v54 }
 0x124   :  { %238 = dma.vmem_to_hbm [thread:$0]  %s234_s13, 128, %s236_s16, [#allocation4]  }
 0x125   :  { %388 = dma.done.wait [#allocation4], 128  }
 0x126   :  { %389 = vsyncadd [#allocation4], 4294967168 }
 0x127   :  { %243 = vsyncpa [#allocation3], 1 }
 0x128   :  { %244 = vsyncpa [#allocation6], 1 }
 0x129   :  { %245 = vsyncpa [#allocation9], 1 }
 0x12a   :  { %246 = vsyncpa [#allocation4], 1 }

</bundles_post_ra>
